<compile_context>
chip_gen: v5e
topology: v5e:2x2
jax: 0.10.0
libtpu: 0.0.40
codegen_flags: <defaults>
</compile_context>

<pallas_src>
import functools

import jax
import jax.numpy as jnp
from jax.experimental import pallas as pl
from jax.experimental.pallas import tpu as pltpu


def _embeddings_kernel(x_ref, pos_ref, ids_ref, proj_ref, b_inner_ref,
                       w_emb_ref, b_emb_ref, gamma_ref, beta_ref, out_ref,
                       *, n_ids, k_tot, eps):
    # One grid step == one (seq tile, batch element).
    x = x_ref[0].astype(jnp.float32)        # (bs, H)  words embeddings
    pos = pos_ref[...].astype(jnp.float32)  # (bs, H)  position embeddings (contiguous rows)
    ids = ids_ref[0]                        # (bs, 2D) pre-offset path ids into [0, k_tot)

    bs = x.shape[0]

    # Combined one-hot over the stacked (tags|subs, all depths) axis.  Each id column
    # hits a disjoint row range of the folded table, so a plain sum of compares is exact.
    iota = jax.lax.broadcasted_iota(jnp.int32, (bs, k_tot), 1)
    oh = jnp.zeros((bs, k_tot), jnp.float32)
    for j in range(n_ids):                  # 2*D tiny unrolled compares (VPU)
        oh = oh + (iota == ids[:, j:j + 1]).astype(jnp.float32)

    # Fused "gather -> concat -> Linear(P*D, 4H)": ONE lane-dense bf16 MXU matmul.
    inner = jnp.dot(oh.astype(jnp.bfloat16), proj_ref[...],
                    preferred_element_type=jnp.float32) + b_inner_ref[...]   # (bs, 4H)
    hidden4 = jnp.maximum(inner, 0.0)       # ReLU
    # TODO(synk): dropout on hidden4 omitted (eval-mode identity).
    path_emb = jnp.dot(hidden4.astype(jnp.bfloat16), w_emb_ref[...],
                       preferred_element_type=jnp.float32) + b_emb_ref[...]  # (bs, H)

    # Sum of the three embedding streams (f32).
    emb = x + pos + path_emb

    # LayerNorm over the hidden dim (rsqrt -> EUP slot).
    mean = jnp.mean(emb, axis=-1, keepdims=True)
    centered = emb - mean
    var = jnp.mean(centered * centered, axis=-1, keepdims=True)
    normed = centered * jax.lax.rsqrt(var + eps)
    result = normed * gamma_ref[...] + beta_ref[...]

    # Single lane-dense store of the whole tile.
    out_ref[0] = result.astype(out_ref.dtype)


def paperlm_embeddings(inputs_embeds, path_tags_seq, path_subs_seq, params,
                       *, layer_norm_eps=1e-12, block_s=None):
    """inputs_embeds: (B,S,H) f32; path_tags_seq/path_subs_seq: (B,S,max_depth) int32."""
    B, S, H = inputs_embeds.shape
    D, Vt, P = params["tag_tables"].shape
    _, Vs, _ = params["subs_tables"].shape
    H4 = params["w_inner"].shape[-1]
    K_tot = D * (Vt + Vs)

    if block_s is None:
        block_s = S
        for cand in (256, 128, 64, 32, 16, 8):
            if S % cand == 0:
                block_s = cand
                break
    assert S % block_s == 0, "seq length must be divisible by the seq tile"
    assert block_s % 8 == 0 or block_s == S, "seq tile must be a multiple of 8"

    # ---- host-side prep (pure views / tiny matmuls) -------------------------------
    # Fold W_inner into the per-depth tables and stack all depths of both streams.
    proj_tag = jnp.einsum("dvp,dpk->dvk", params["tag_tables"], params["w_inner"])
    proj_sub = jnp.einsum("dvp,dpk->dvk", params["subs_tables"], params["w_inner"])
    proj = jnp.concatenate([proj_tag.reshape(D * Vt, H4),
                            proj_sub.reshape(D * Vs, H4)], axis=0).astype(jnp.bfloat16)
    w_emb = params["w_emb"].astype(jnp.bfloat16)

    # Pre-offset ids so each (depth, stream) maps to its row range of the folded table.
    tag_off = (jnp.arange(D, dtype=jnp.int32) * Vt)[None, None, :]
    sub_off = (D * Vt + jnp.arange(D, dtype=jnp.int32) * Vs)[None, None, :]
    path_ids = jnp.concatenate([path_tags_seq.astype(jnp.int32) + tag_off,
                                path_subs_seq.astype(jnp.int32) + sub_off],
                               axis=-1)                       # (B, S, 2D)

    kernel = functools.partial(_embeddings_kernel, n_ids=2 * D, k_tot=K_tot,
                               eps=layer_norm_eps)

    def const_spec(shape):
        return pl.BlockSpec(shape, lambda s, b: (0,) * len(shape))

    grid = (S // block_s, B)   # seq tiles outermost -> pos block fetched once per tile row

    cost = pl.CostEstimate(
        flops=2 * B * S * (K_tot * H4 + H4 * H),
        transcendentals=B * S,
        bytes_accessed=(B * S * H * 4 + S * H * 4 + B * S * 2 * D * 4
                        + K_tot * H4 * 2 + H4 * H * 2 + (H4 + 3 * H) * 4
                        + B * S * H * 4))

    return pl.pallas_call(
        kernel,
        out_shape=jax.ShapeDtypeStruct((B, S, H), inputs_embeds.dtype),
        grid=grid,
        in_specs=[
            pl.BlockSpec((1, block_s, H), lambda s, b: (b, s, 0)),      # inputs_embeds
            pl.BlockSpec((block_s, H),    lambda s, b: (s, 0)),         # position table rows
            pl.BlockSpec((1, block_s, 2 * D), lambda s, b: (b, s, 0)),  # pre-offset path ids
            const_spec((K_tot, H4)),                                    # folded proj table (bf16)
            const_spec((1, H4)),                                        # b_inner
            const_spec((H4, H)),                                        # W inner2emb (bf16)
            const_spec((1, H)),                                         # b inner2emb
            const_spec((1, H)),                                         # LayerNorm gamma
            const_spec((1, H)),                                         # LayerNorm beta
        ],
        out_specs=pl.BlockSpec((1, block_s, H), lambda s, b: (b, s, 0)),
        compiler_params=pltpu.CompilerParams(
            dimension_semantics=("parallel", "parallel"),
            vmem_limit_bytes=48 * 1024 * 1024),
        cost_estimate=cost,
    )(inputs_embeds, params["pos_table"], path_ids,
      proj, params["b_inner"], w_emb, params["b_emb"],
      params["gamma"], params["beta"])


def _reference(inputs_embeds, path_tags_seq, path_subs_seq, params,
               *, layer_norm_eps=1e-12):
    """Pure-JAX f32 replica of the PyTorch forward (non-pure_text, eval mode)."""
    B, S, H = inputs_embeds.shape
    D, Vt, P = params["tag_tables"].shape

    pos = params["pos_table"][:S][None]                              # (1, S, H)

    tag_emb = jnp.concatenate(
        [params["tag_tables"][i][path_tags_seq[:, :, i]] for i in range(D)], axis=-1)
    subs_emb = jnp.concatenate(
        [params["subs_tables"][i][path_subs_seq[:, :, i]] for i in range(D)], axis=-1)
    path_units = tag_emb + subs_emb                                  # (B, S, D*P)

    w_inner_flat = params["w_inner"].reshape(D * P, -1)              # (D*P, 4H)
    inner = jnp.einsum("bsp,pk->bsk", path_units, w_inner_flat) + params["b_inner"][0]
    hidden4 = jax.nn.relu(inner)
    path_emb = jnp.einsum("bsk,kh->bsh", hidden4, params["w_emb"]) + params["b_emb"][0]

    emb = inputs_embeds + pos + path_emb
    mean = emb.mean(-1, keepdims=True)
    var = ((emb - mean) ** 2).mean(-1, keepdims=True)
    normed = (emb - mean) / jnp.sqrt(var + layer_norm_eps)
    return normed * params["gamma"][0] + params["beta"][0]


if __name__ == "__main__":
    # Small config: batch=2, seq=8, hidden=32, max_depth=4, path_unit_hidden=8,
    # tag vocab=12, subs vocab=10, max_position_embeddings=64.
    B, S, H = 2, 8, 32
    D, P = 4, 8
    VT, VS = 12, 10
    MAX_POS = 64
    H4 = 4 * H
    EPS = 1e-12

    key = jax.random.PRNGKey(0)
    keys = jax.random.split(key, 12)
    scale = 0.02

    params = {
        "pos_table":   scale * jax.random.normal(keys[0], (MAX_POS, H), jnp.float32),
        "tag_tables":  scale * jax.random.normal(keys[1], (D, VT, P), jnp.float32),
        "subs_tables": scale * jax.random.normal(keys[2], (D, VS, P), jnp.float32),
        # nn.Linear weights stored pre-transposed (in, out); W_inner reshaped (D, P, 4H)
        # so column block i of the concatenated input maps to W_inner[i].
        "w_inner": scale * jax.random.normal(keys[3], (D, P, H4), jnp.float32),
        "b_inner": scale * jax.random.normal(keys[4], (1, H4), jnp.float32),
        "w_emb":   scale * jax.random.normal(keys[5], (H4, H), jnp.float32),
        "b_emb":   scale * jax.random.normal(keys[6], (1, H), jnp.float32),
        "gamma": 1.0 + scale * jax.random.normal(keys[7], (1, H), jnp.float32),
        "beta":  scale * jax.random.normal(keys[8], (1, H), jnp.float32),
    }

    inputs_embeds = jax.random.normal(keys[9], (B, S, H), jnp.float32)
    path_tags_seq = jax.random.randint(keys[10], (B, S, D), 0, VT, jnp.int32)
    path_subs_seq = jax.random.randint(keys[11], (B, S, D), 0, VS, jnp.int32)

    out = paperlm_embeddings(inputs_embeds, path_tags_seq, path_subs_seq, params,
                             layer_norm_eps=EPS)
    out = jax.block_until_ready(out)

    ref = _reference(inputs_embeds, path_tags_seq, path_subs_seq, params,
                     layer_norm_eps=EPS)
    assert out.shape == (B, S, H)
    # bf16 matmul operands (f32 accumulation) vs f32 reference -> loosened tolerance.
    assert jnp.allclose(out, ref, atol=1e-2, rtol=1e-2), (
        f"max abs err {jnp.max(jnp.abs(out - ref))}")

    print("KERNEL_OK")
</pallas_src>

<mosaic_0001>
module attributes {stable_mosaic.version = 11 : i64} {
  func.func @_embeddings_kernel(%arg0: i32, %arg1: i32, %arg2: memref<1x8x32xf32, #tpu.memory_space<vmem>>, %arg3: memref<8x32xf32, #tpu.memory_space<vmem>>, %arg4: memref<1x8x8xi32, #tpu.memory_space<vmem>>, %arg5: memref<88x128xbf16, #tpu.memory_space<vmem>>, %arg6: memref<1x128xf32, #tpu.memory_space<vmem>>, %arg7: memref<128x32xbf16, #tpu.memory_space<vmem>>, %arg8: memref<1x32xf32, #tpu.memory_space<vmem>>, %arg9: memref<1x32xf32, #tpu.memory_space<vmem>>, %arg10: memref<1x32xf32, #tpu.memory_space<vmem>>, %arg11: memref<1x8x32xf32, #tpu.memory_space<vmem>>) attributes {dimension_semantics = [#tpu.dimension_semantics<parallel>, #tpu.dimension_semantics<parallel>], iteration_bounds = array<i64: 1, 2>, scalar_prefetch = 0 : i64, scratch_operands = 0 : i64, tpu.core_type = #tpu.core_type<tc>, window_params = [{transform_indices = @transform_0, window_bounds = array<i64: 1, 8, 32>}, {transform_indices = @transform_1, window_bounds = array<i64: 8, 32>}, {transform_indices = @transform_2, window_bounds = array<i64: 1, 8, 8>}, {pipeline_mode = #tpu.pipeline_mode<synchronous>, transform_indices = @transform_3, window_bounds = array<i64: 88, 128>}, {pipeline_mode = #tpu.pipeline_mode<synchronous>, transform_indices = @transform_4, window_bounds = array<i64: 1, 128>}, {pipeline_mode = #tpu.pipeline_mode<synchronous>, transform_indices = @transform_5, window_bounds = array<i64: 128, 32>}, {pipeline_mode = #tpu.pipeline_mode<synchronous>, transform_indices = @transform_6, window_bounds = array<i64: 1, 32>}, {pipeline_mode = #tpu.pipeline_mode<synchronous>, transform_indices = @transform_7, window_bounds = array<i64: 1, 32>}, {pipeline_mode = #tpu.pipeline_mode<synchronous>, transform_indices = @transform_8, window_bounds = array<i64: 1, 32>}, {transform_indices = @transform_9, window_bounds = array<i64: 1, 8, 32>}]} {
    %c0 = arith.constant 0 : index
    %c0_0 = arith.constant 0 : index
    %c0_1 = arith.constant 0 : index
    %0 = vector.load %arg2[%c0, %c0_0, %c0_1] : memref<1x8x32xf32, #tpu.memory_space<vmem>>, vector<1x8x32xf32>
    %1 = vector.shape_cast %0 : vector<1x8x32xf32> to vector<8x32xf32>
    %c0_2 = arith.constant 0 : index
    %c0_3 = arith.constant 0 : index
    %2 = vector.load %arg3[%c0_2, %c0_3] : memref<8x32xf32, #tpu.memory_space<vmem>>, vector<8x32xf32>
    %c0_4 = arith.constant 0 : index
    %c0_5 = arith.constant 0 : index
    %c0_6 = arith.constant 0 : index
    %3 = vector.load %arg4[%c0_4, %c0_5, %c0_6] : memref<1x8x8xi32, #tpu.memory_space<vmem>>, vector<1x8x8xi32>
    %4 = vector.shape_cast %3 : vector<1x8x8xi32> to vector<8x8xi32>
    %5 = tpu.iota {dimensions = array<i32: 1>} : vector<8x88xi32>
    %cst = arith.constant 0.000000e+00 : f32
    %6 = vector.broadcast %cst : f32 to vector<8x88xf32>
    %7 = vector.extract_strided_slice %4 {offsets = [0, 0], sizes = [8, 1], strides = [1, 1]} : vector<8x8xi32> to vector<8x1xi32>
    %8 = vector.broadcast %7 : vector<8x1xi32> to vector<8x88xi32>
    %9 = arith.cmpi eq, %5, %8 : vector<8x88xi32>
    %10 = arith.extui %9 : vector<8x88xi1> to vector<8x88xi32>
    %11 = arith.sitofp %10 : vector<8x88xi32> to vector<8x88xf32>
    %12 = arith.addf %6, %11 : vector<8x88xf32>
    %13 = vector.extract_strided_slice %4 {offsets = [0, 1], sizes = [8, 1], strides = [1, 1]} : vector<8x8xi32> to vector<8x1xi32>
    %14 = vector.broadcast %13 : vector<8x1xi32> to vector<8x88xi32>
    %15 = arith.cmpi eq, %5, %14 : vector<8x88xi32>
    %16 = arith.extui %15 : vector<8x88xi1> to vector<8x88xi32>
    %17 = arith.sitofp %16 : vector<8x88xi32> to vector<8x88xf32>
    %18 = arith.addf %12, %17 : vector<8x88xf32>
    %19 = vector.extract_strided_slice %4 {offsets = [0, 2], sizes = [8, 1], strides = [1, 1]} : vector<8x8xi32> to vector<8x1xi32>
    %20 = vector.broadcast %19 : vector<8x1xi32> to vector<8x88xi32>
    %21 = arith.cmpi eq, %5, %20 : vector<8x88xi32>
    %22 = arith.extui %21 : vector<8x88xi1> to vector<8x88xi32>
    %23 = arith.sitofp %22 : vector<8x88xi32> to vector<8x88xf32>
    %24 = arith.addf %18, %23 : vector<8x88xf32>
    %25 = vector.extract_strided_slice %4 {offsets = [0, 3], sizes = [8, 1], strides = [1, 1]} : vector<8x8xi32> to vector<8x1xi32>
    %26 = vector.broadcast %25 : vector<8x1xi32> to vector<8x88xi32>
    %27 = arith.cmpi eq, %5, %26 : vector<8x88xi32>
    %28 = arith.extui %27 : vector<8x88xi1> to vector<8x88xi32>
    %29 = arith.sitofp %28 : vector<8x88xi32> to vector<8x88xf32>
    %30 = arith.addf %24, %29 : vector<8x88xf32>
    %31 = vector.extract_strided_slice %4 {offsets = [0, 4], sizes = [8, 1], strides = [1, 1]} : vector<8x8xi32> to vector<8x1xi32>
    %32 = vector.broadcast %31 : vector<8x1xi32> to vector<8x88xi32>
    %33 = arith.cmpi eq, %5, %32 : vector<8x88xi32>
    %34 = arith.extui %33 : vector<8x88xi1> to vector<8x88xi32>
    %35 = arith.sitofp %34 : vector<8x88xi32> to vector<8x88xf32>
    %36 = arith.addf %30, %35 : vector<8x88xf32>
    %37 = vector.extract_strided_slice %4 {offsets = [0, 5], sizes = [8, 1], strides = [1, 1]} : vector<8x8xi32> to vector<8x1xi32>
    %38 = vector.broadcast %37 : vector<8x1xi32> to vector<8x88xi32>
    %39 = arith.cmpi eq, %5, %38 : vector<8x88xi32>
    %40 = arith.extui %39 : vector<8x88xi1> to vector<8x88xi32>
    %41 = arith.sitofp %40 : vector<8x88xi32> to vector<8x88xf32>
    %42 = arith.addf %36, %41 : vector<8x88xf32>
    %43 = vector.extract_strided_slice %4 {offsets = [0, 6], sizes = [8, 1], strides = [1, 1]} : vector<8x8xi32> to vector<8x1xi32>
    %44 = vector.broadcast %43 : vector<8x1xi32> to vector<8x88xi32>
    %45 = arith.cmpi eq, %5, %44 : vector<8x88xi32>
    %46 = arith.extui %45 : vector<8x88xi1> to vector<8x88xi32>
    %47 = arith.sitofp %46 : vector<8x88xi32> to vector<8x88xf32>
    %48 = arith.addf %42, %47 : vector<8x88xf32>
    %49 = vector.extract_strided_slice %4 {offsets = [0, 7], sizes = [8, 1], strides = [1, 1]} : vector<8x8xi32> to vector<8x1xi32>
    %50 = vector.broadcast %49 : vector<8x1xi32> to vector<8x88xi32>
    %51 = arith.cmpi eq, %5, %50 : vector<8x88xi32>
    %52 = arith.extui %51 : vector<8x88xi1> to vector<8x88xi32>
    %53 = arith.sitofp %52 : vector<8x88xi32> to vector<8x88xf32>
    %54 = arith.addf %48, %53 : vector<8x88xf32>
    %55 = arith.truncf %54 : vector<8x88xf32> to vector<8x88xbf16>
    %c0_7 = arith.constant 0 : index
    %c0_8 = arith.constant 0 : index
    %56 = vector.load %arg5[%c0_7, %c0_8] : memref<88x128xbf16, #tpu.memory_space<vmem>>, vector<88x128xbf16>
    %cst_9 = arith.constant dense<0.000000e+00> : vector<8x128xf32>
    %57 = tpu.matmul %55, %56, %cst_9 {dimension_numbers = #tpu.dot_dimension_numbers<[1], [0], [0], [1], [0, 0, 1, 1], [], []>} : vector<8x88xbf16>, vector<88x128xbf16>, vector<8x128xf32> -> vector<8x128xf32>
    %c0_10 = arith.constant 0 : index
    %c0_11 = arith.constant 0 : index
    %58 = vector.load %arg6[%c0_10, %c0_11] : memref<1x128xf32, #tpu.memory_space<vmem>>, vector<1x128xf32>
    %59 = vector.broadcast %58 : vector<1x128xf32> to vector<8x128xf32>
    %60 = arith.addf %57, %59 : vector<8x128xf32>
    %cst_12 = arith.constant 0.000000e+00 : f32
    %61 = vector.broadcast %cst_12 : f32 to vector<8x128xf32>
    %62 = arith.maximumf %60, %61 : vector<8x128xf32>
    %63 = arith.truncf %62 : vector<8x128xf32> to vector<8x128xbf16>
    %c0_13 = arith.constant 0 : index
    %c0_14 = arith.constant 0 : index
    %64 = vector.load %arg7[%c0_13, %c0_14] : memref<128x32xbf16, #tpu.memory_space<vmem>>, vector<128x32xbf16>
    %cst_15 = arith.constant dense<0.000000e+00> : vector<8x32xf32>
    %65 = tpu.matmul %63, %64, %cst_15 {dimension_numbers = #tpu.dot_dimension_numbers<[1], [0], [0], [1], [0, 0, 1, 1], [], []>} : vector<8x128xbf16>, vector<128x32xbf16>, vector<8x32xf32> -> vector<8x32xf32>
    %c0_16 = arith.constant 0 : index
    %c0_17 = arith.constant 0 : index
    %66 = vector.load %arg8[%c0_16, %c0_17] : memref<1x32xf32, #tpu.memory_space<vmem>>, vector<1x32xf32>
    %67 = vector.broadcast %66 : vector<1x32xf32> to vector<8x32xf32>
    %68 = arith.addf %65, %67 : vector<8x32xf32>
    %69 = arith.addf %1, %2 : vector<8x32xf32>
    %70 = arith.addf %69, %68 : vector<8x32xf32>
    %cst_18 = arith.constant dense<0.000000e+00> : vector<8xf32>
    %71 = vector.multi_reduction <add>, %70, %cst_18 [1] : vector<8x32xf32> to vector<8xf32>
    %72 = vector.shape_cast %71 : vector<8xf32> to vector<8x1xf32>
    %cst_19 = arith.constant 3.200000e+01 : f32
    %73 = vector.broadcast %cst_19 : f32 to vector<8x1xf32>
    %74 = arith.divf %72, %73 : vector<8x1xf32>
    %75 = vector.broadcast %74 : vector<8x1xf32> to vector<8x32xf32>
    %76 = arith.subf %70, %75 : vector<8x32xf32>
    %77 = arith.mulf %76, %76 : vector<8x32xf32>
    %cst_20 = arith.constant dense<0.000000e+00> : vector<8xf32>
    %78 = vector.multi_reduction <add>, %77, %cst_20 [1] : vector<8x32xf32> to vector<8xf32>
    %79 = vector.shape_cast %78 : vector<8xf32> to vector<8x1xf32>
    %cst_21 = arith.constant 3.200000e+01 : f32
    %80 = vector.broadcast %cst_21 : f32 to vector<8x1xf32>
    %81 = arith.divf %79, %80 : vector<8x1xf32>
    %cst_22 = arith.constant 9.99999996E-13 : f32
    %82 = vector.broadcast %cst_22 : f32 to vector<8x1xf32>
    %83 = arith.addf %81, %82 : vector<8x1xf32>
    %84 = math.rsqrt %83 : vector<8x1xf32>
    %85 = vector.broadcast %84 : vector<8x1xf32> to vector<8x32xf32>
    %86 = arith.mulf %76, %85 : vector<8x32xf32>
    %c0_23 = arith.constant 0 : index
    %c0_24 = arith.constant 0 : index
    %87 = vector.load %arg9[%c0_23, %c0_24] : memref<1x32xf32, #tpu.memory_space<vmem>>, vector<1x32xf32>
    %88 = vector.broadcast %87 : vector<1x32xf32> to vector<8x32xf32>
    %89 = arith.mulf %86, %88 : vector<8x32xf32>
    %c0_25 = arith.constant 0 : index
    %c0_26 = arith.constant 0 : index
    %90 = vector.load %arg10[%c0_25, %c0_26] : memref<1x32xf32, #tpu.memory_space<vmem>>, vector<1x32xf32>
    %91 = vector.broadcast %90 : vector<1x32xf32> to vector<8x32xf32>
    %92 = arith.addf %89, %91 : vector<8x32xf32>
    %c0_27 = arith.constant 0 : index
    %c0_28 = arith.constant 0 : index
    %c0_29 = arith.constant 0 : index
    %93 = vector.load %arg11[%c0_27, %c0_28, %c0_29] : memref<1x8x32xf32, #tpu.memory_space<vmem>>, vector<1x8x32xf32>
    %94 = vector.shape_cast %93 : vector<1x8x32xf32> to vector<8x32xf32>
    %95 = vector.shape_cast %92 : vector<8x32xf32> to vector<1x8x32xf32>
    tpu.vector_store %arg11[%c0_27, %c0_28, %c0_29], %95 {strides = array<i32>} : memref<1x8x32xf32, #tpu.memory_space<vmem>>, vector<1x8x32xf32>,
    return
  }
  func.func @transform_0(%arg0: i32, %arg1: i32) -> (i32, i32, i32) {
    %c0_i32 = arith.constant 0 : i32
    %c0_i32_0 = arith.constant 0 : i32
    return %arg1, %arg0, %c0_i32 : i32, i32, i32
  }
  func.func @transform_1(%arg0: i32, %arg1: i32) -> (i32, i32) {
    %c0_i32 = arith.constant 0 : i32
    %c0_i32_0 = arith.constant 0 : i32
    return %arg0, %c0_i32 : i32, i32
  }
  func.func @transform_2(%arg0: i32, %arg1: i32) -> (i32, i32, i32) {
    %c0_i32 = arith.constant 0 : i32
    %c0_i32_0 = arith.constant 0 : i32
    return %arg1, %arg0, %c0_i32 : i32, i32, i32
  }
  func.func @transform_3(%arg0: i32, %arg1: i32) -> (i32, i32) {
    %c0_i32 = arith.constant 0 : i32
    %c0_i32_0 = arith.constant 0 : i32
    %c0_i32_1 = arith.constant 0 : i32
    return %c0_i32, %c0_i32_0 : i32, i32
  }
  func.func @transform_4(%arg0: i32, %arg1: i32) -> (i32, i32) {
    %c0_i32 = arith.constant 0 : i32
    %c0_i32_0 = arith.constant 0 : i32
    %c0_i32_1 = arith.constant 0 : i32
    return %c0_i32, %c0_i32_0 : i32, i32
  }
  func.func @transform_5(%arg0: i32, %arg1: i32) -> (i32, i32) {
    %c0_i32 = arith.constant 0 : i32
    %c0_i32_0 = arith.constant 0 : i32
    %c0_i32_1 = arith.constant 0 : i32
    return %c0_i32, %c0_i32_0 : i32, i32
  }
  func.func @transform_6(%arg0: i32, %arg1: i32) -> (i32, i32) {
    %c0_i32 = arith.constant 0 : i32
    %c0_i32_0 = arith.constant 0 : i32
    %c0_i32_1 = arith.constant 0 : i32
    return %c0_i32, %c0_i32_0 : i32, i32
  }
  func.func @transform_7(%arg0: i32, %arg1: i32) -> (i32, i32) {
    %c0_i32 = arith.constant 0 : i32
    %c0_i32_0 = arith.constant 0 : i32
    %c0_i32_1 = arith.constant 0 : i32
    return %c0_i32, %c0_i32_0 : i32, i32
  }
  func.func @transform_8(%arg0: i32, %arg1: i32) -> (i32, i32) {
    %c0_i32 = arith.constant 0 : i32
    %c0_i32_0 = arith.constant 0 : i32
    %c0_i32_1 = arith.constant 0 : i32
    return %c0_i32, %c0_i32_0 : i32, i32
  }
  func.func @transform_9(%arg0: i32, %arg1: i32) -> (i32, i32, i32) {
    %c0_i32 = arith.constant 0 : i32
    %c0_i32_0 = arith.constant 0 : i32
    return %arg1, %arg0, %c0_i32 : i32, i32, i32
  }
}

</mosaic_0001>

<bundles_post_ra>
// kernel: tpu_custom_call.1
= control target key start
LH: loop header
LB: loop body
LE: loop exit
PB: predicated region body
PF: predicated region fallthrough
CT: control target
= control target key end

     0   :  { %s1250_s0 = inlined_call_operand.vmem [shape: f32[2,8,32], index: 0, kind: input, shape index: {}]   ;;  %s1251_s1 = inlined_call_operand.vmem [shape: f32[64,32], index: 1, kind: input, shape index: {}]   ;;  %s1252_s2 = inlined_call_operand.vmem [shape: s32[2,8,8], index: 2, kind: input, shape index: {}]   ;;  %s1253_s3 = inlined_call_operand.vmem [shape: bf16[88,128], index: 3, kind: input, shape index: {}]   ;;  %s1254_s4 = inlined_call_operand.vmem [shape: f32[1,128], index: 4, kind: input, shape index: {}]   ;;  %s1255_s5 = inlined_call_operand.vmem [shape: bf16[128,32], index: 5, kind: input, shape index: {}]   ;;  %s1256_s6 = inlined_call_operand.vmem [shape: f32[1,32], index: 6, kind: input, shape index: {}]   ;;  %s1257_s7 = inlined_call_operand.vmem [shape: f32[1,32], index: 7, kind: input, shape index: {}]   ;;  %s1258_s8 = inlined_call_operand.vmem [shape: f32[1,32], index: 8, kind: input, shape index: {}]   ;;  %s1259_s9 = inlined_call_operand.hbm [shape: f32[2,8,32], index: 9, kind: output, shape index: {}]  }
   0x1   :  { %1261 = sst [smem:[#allocation5_spill]] %s1250_s0 }
   0x2   :  { %14 = vsyncpa [#allocation3], 0 }
   0x3   :  { %16 = vsyncpa [#allocation3 + $0x1], 0  ;;  %s1083_s30 = smov 0   ;;  %s1085_s10 = smov 0  }
   0x4   :  { %s1087_s11 = smov 0   ;;  %s1089_s12 = smov 0  }
   0x5   :  { %s1091_s13 = smov 0   ;;  %s1093_s14 = smov 0  }
   0x6 LB: > { %s774_s15 = sadd.s32 4294967295, %s1021_s14   ;;  %s775_s16 = sadd.s32 4294967294, %s1021_s14   ;;  %s1021_s14 = sphi %s1093_s14, %s22_s14   ;;  %s1017_s13 = sphi %s1091_s13, %s1270_s13   ;;  %s1013_s12 = sphi %s1089_s12, %s1269_s12   ;;  %s1009_s11 = sphi %s1087_s11, %s1268_s11   ;;  %s1005_s10 = sphi %s1085_s10, %s1267_s10   ;;  %s1001_s30 = sphi %s1083_s30, %s1266_s30  }
   0x7   : > { %s31_s17 = sadd.s32 1, %s1017_s13  ;;  %s251_s18 = sadd.s32 1, %s1009_s11 }
   0x8   : > { %p32_p0 = scmp.ge.s32.totalorder %s31_s17, 2  ;;  %p261_p1 = scmp.ne.s32.totalorder %s1009_s11, %s1005_s10 }
   0x9   : > { %p262_p2 = scmp.eq.s32.totalorder %s774_s15, 1  ;;  %p267_p3 = scmp.ne.s32.totalorder %s1005_s10, %s1001_s30 }
   0xa   : > { %s1272_s17 = smov (%p32_p0, %s31_s17), 0  ;;  %p268_p5 = scmp.eq.s32.totalorder %s775_s16, 1 }
   0xb   : > { %p1123_p4 = por %p262_p2, %p261_p1  ;;  %s246_s20 = ssub.s32 %s1017_s13, %s1272_s17 }
   0xc   : > { %p779_p6 = scmp.ge.s32.totalorder %s1021_s14, 1  ;;  %p249_p7 = scmp.eq.s32.totalorder %s246_s20, 0 }
   0xd   : > { %p1130_p8 = por %p268_p5, %p267_p3  ;;  %p331_p9 = scmp.lt.s32.totalorder %s1021_s14, 3 }
   0xe   : > { %s1136_s22 = scalar_select %p249_p7, %s1009_s11, %s251_s18  }
   0xf   : > { %p332_p10 = pnand %p779_p6, %p331_p9 }
  0x10   : > { %p380_p11 = scmp.lt.s32.totalorder (!%p332_p10), %s1013_s12, 1  ;;  %s1265_s0 = sld [smem:[#allocation5_spill]] (!%p332_p10) }
  0x11   : > { %335 = sbr.rel (%p332_p10) target bundleno = 702 (0x2be), region = 56 }
  0x16   : > { %v1023_v0 = vmov 0   ;;  %v1024_v1 = vmov 2   ;;  %s1140_s23 = scalar_select %p380_p11, %s1013_s12, 1  ;;  %v1025_v2 = vmov 4   ;;  %v1026_v4 = vmov 1   ;;  %v852_v13 = vld [vmem:[%s1253_s3 + $0x20] sm:$0xff] }
  0x17   : > { %926 = vset.pattern.permute.xlu0 %v1023_v0  ;;  %928 = vset.pattern.permute.xlu1 %v1024_v1  ;;  %v1027_v5 = vmov 3   ;;  %v1028_v6 = vmov 5   ;;  %v1029_v7 = vmov 6   ;;  %v1030_v8 = vmov 7   ;;  %v471_v9 = vld [vmem:[%s1253_s3 + $0x28] sm:$0xf] }
  0x18   : > { %930 = vset.pattern.permute.xlu2 %v1025_v2  ;;  %s1260_s24 = sshll.u32 %s1140_s23, 3  ;;  %v497_v10 = vunpack.c.l.b16 %v471_v9  ;;  %vm513_vm0 = vcmask 1043456   ;;  %v851_v14 = vld [vmem:[%s1253_s3 + $0x18] sm:$0xff]  ;;  %v850_v15 = vld [vmem:[%s1253_s3 + $0x10] sm:$0xff]  ;;  %v849_v16 = vld [vmem:[%s1253_s3 + $0x8] sm:$0xff]  ;;  %v402_v21 = vlaneseq  ;;  %v1031_v31 = vmov 0.0  }
  0x19   : > { %s397_s27 = scalar_lea.vmem %s1252_s2, %s1260_s24  ;;  %v848_v17 = vld [vmem:[%s1253_s3] sm:$0xff]  ;;  %v860_v19 = vld [vmem:[%s1255_s5 + $0x38] sm:$0xff]  ;;  %v859_v20 = vld [vmem:[%s1255_s5 + $0x30] sm:$0xff]  ;;  %vm509_vm9 = vcmask 719872   ;;  %s1264_s28 = sshll.u32 %s1140_s23, 3  ;;  %vm615_vm10 = vcmask 261120  }
  0x1a   : > { %v401_v3 = vld [vmem:[%s397_s27] sm:$0xff]  ;;  %v503_v11 = vpack.c.b16 %v497_v10, %v497_v10  ;;  %600 = vmatpush.bf16.msra.mxu1 %v860_v19  ;;  %v858_v24 = vld [vmem:[%s1255_s5 + $0x28] sm:$0xff]  ;;  %v403_v25 = vand.u32 127, %v402_v21  ;;  %v856_v30 = vld [vmem:[%s1255_s5 + $0x18] sm:$0xff]  ;;  %s386_s16 = scalar_lea.vmem %s1265_s0, %s1264_s28  ;;  %s377_s23 = sand.u32 1, %s1005_s10  }
  0x1b   : > { %405 = vperm.xlu0 %926, %v401_v3   ;;  %419 = vperm.xlu1 %928, %v401_v3   ;;  %v857_v27 = vld [vmem:[%s1255_s5 + $0x20] sm:$0xff]  ;;  %v855_v37 = vld [vmem:[%s1255_s5 + $0x10] sm:$0xff]  ;;  %v854_v51 = vld [vmem:[%s1255_s5 + $0x8] sm:$0xff]  ;;  %s780_s24 = sshll.u32 %s377_s23, 3  ;;  %s845_s27 = sshll.u32 %s1013_s12, 3 }
  0x1c   : > { %433 = vperm.xlu2 %930, %v401_v3   ;;  %v515_v12 = vsel %vm513_vm0, %v503_v11, 0  ;;  %v853_v52 = vld [vmem:[%s1255_s5] sm:$0xff]  ;;  %s668_s18 = scalar_lea.hbm %s1259_s9, %s845_s27  ;;  %s379_s26 = scalar_lea.vmem [#allocation2], %s780_s24 }
  0x1d   : > { %519 = vmatpush.bf16.msra.mxu0 %v515_v12  ;;  %v935_v53 = vld [vmem:[%s1254_s4] ss:$0 sm:$0xff]  ;;  %s670_s12 = sshll.u32 %s379_s26, 4  ;;  %s672_s0 = sshll.u32 %s668_s18, 4  ;;  %s671_s12 = int_to_ptr.vmem [resolvable:$true] %s670_s12  ;;  %s673_s0 = int_to_ptr.hbm [resolvable:$true] %s672_s0 }
  0x1e   : > { %601 = vmatpush.bf16.msra.mxu1 %v859_v20  ;;  %v399_v59 = vld [vmem:[%s386_s16] sm:$0xff]  ;;  %s657_s28 = scalar_lea.sflag [#allocation3], %s377_s23  ;;  %s957_s29 = sshra.s32 %s673_s0, 4  ;;  %s958_s29 = int_to_ptr.hbm [resolvable:$true] %s957_s29 }
  0x1f   : > { %v400_v60 = vld [vmem:[%s1251_s1] sm:$0xff]  ;;  %s959_s27 = scalar_lea.hbm %s958_s29, 8  ;;  %s963_s24 = scalar_lea.hbm %s1259_s9, 16 }
  0x20   : > { %v936_v61 = vld [vmem:[%s1256_s6] ss:$0 sm:$0xff]  ;;  %v613_v62 = vadd.f32 %v400_v60, %v399_v59  ;;  %p960_p12 = scmp.ne.s32.totalorder %s958_s29, %s959_s27  ;;  %p964_p1 = scmp.lt.s32.totalorder %s958_s29, %s1259_s9 }
  0x21   : > { %520 = vmatpush.bf16.msra.mxu0 %v852_v13  ;;  %p965_p2 = scmp.lt.s32.totalorder %s963_s24, %s959_s27 }
  0x22   : > { %602 = vmatpush.bf16.msra.mxu1 %v858_v24  ;;  %p961_p13 = pnand %p960_p12, %p1123_p4 }
  0x23   : > { %927 = vset.pattern.permute.xlu0 %v1026_v4  ;;  %929 = vset.pattern.permute.xlu1 %v1027_v5  ;;  %v1032_v4 = vmov 32.0   ;;  %p966_p3 = por %p965_p2, %p964_p1 }
  0x24   : > { %412 = vperm.xlu0 %927, %v401_v3   ;;  %426 = vperm.xlu1 %929, %v401_v3   ;;  %939 = vrcp.f32 %v1032_v4  ;;  %p962_p0 = pneg %p961_p13 }
  0x25   : > { %931 = vset.pattern.permute.xlu2 %v1028_v6  ;;  %521 = vmatpush.bf16.msra.mxu0 %v851_v14 }
  0x26   : > { %440 = vperm.xlu2 %931, %v401_v3   ;;  %603 = vmatpush.bf16.msra.mxu1 %v857_v27  ;;  %p967_p5 = pnand %p966_p3, %p962_p0 }
  0x29   : > { %522 = vmatpush.bf16.msra.mxu0 %v850_v15 }
  0x2a   : > { %604 = vmatpush.bf16.msra.mxu1 %v856_v30  ;;  %v940_v5 = vpop.eup %939 }
  0x2b   : > { %v620_v6 = vmul.f32 32.0, %v940_v5  ;;  %vm624_vm11 = vweird.f32 %v940_v5 }
  0x2c   : > { %932 = vset.pattern.permute.xlu1 %v1029_v7  ;;  %934 = vset.pattern.permute.xlu0 %v1030_v8 }
  0x2d   : > { %447 = vperm.xlu1 %932, %v401_v3   ;;  %523 = vmatpush.bf16.msra.mxu0 %v849_v16  ;;  %v621_v7 = vsub.f32 1.0, %v620_v6 }
  0x2e   : > { %933 = vset.pattern.permute.xlu2 %v1030_v8  ;;  %605 = vmatpush.bf16.msra.mxu1 %v855_v37 }
  0x2f   : > { %454 = vperm.xlu2 %933, %v401_v3   ;;  %v622_v8 = vmul.f32 %v940_v5, %v621_v7 }
  0x31   : > { %524 = vmatpush.bf16.msra.mxu0 %v848_v17  ;;  %v623_v9 = vadd.f32 %v940_v5, %v622_v8 }
  0x32   : > { %606 = vmatpush.bf16.msra.mxu1 %v854_v51 }
  0x33   : > { %v625_v10 = vsel %vm624_vm11, %v940_v5, %v623_v9 }
  0x36   : > { %607 = vmatpush.bf16.msra.mxu1 %v853_v52 }
  0x76   : > { %v434_v18 = vpop.permute.xlu2 %433 }
  0x77   : > { %vm435_vm5 = vcmp.eq.s32.totalorder %v403_v25, %v434_v18 }
  0x78   : > { %v787_v41 = vsel %vm435_vm5, 1.0, %v1031_v31 }
  0x80   : > { %v441_v26 = vpop.permute.xlu2 %440 }
  0x81   : > { %vm442_vm6 = vcmp.eq.s32.totalorder %v403_v25, %v441_v26 }
  0x82   : > { %v788_v44 = vsel %vm442_vm6, 1.0, %v1031_v31 }
  0x89   : > { %v455_v39 = vpop.permute.xlu2 %454 }
  0x8a   : > { %vm456_vm7 = vcmp.eq.s32.totalorder %v403_v25, %v455_v39 }
  0x8b   : > { %v790_v47 = vsel %vm456_vm7, 1.0, %v1031_v31 }
  0x8d   : > { %v406_v22 = vpop.permute.xlu0 %405  ;;  %v420_v23 = vpop.permute.xlu1 %419 }
  0x8e   : > { %vm407_vm1 = vcmp.eq.s32.totalorder %v403_v25, %v406_v22  ;;  %vm421_vm2 = vcmp.eq.s32.totalorder %v403_v25, %v420_v23 }
  0x8f   : > { %v783_v32 = vsel %vm407_vm1, 1.0, %v1031_v31  ;;  %v785_v35 = vsel %vm421_vm2, 1.0, %v1031_v31 }
  0x96   : > { %v413_v28 = vpop.permute.xlu0 %412  ;;  %v427_v29 = vpop.permute.xlu1 %426 }
  0x97   : > { %vm414_vm3 = vcmp.eq.s32.totalorder %v403_v25, %v413_v28  ;;  %vm428_vm4 = vcmp.eq.s32.totalorder %v403_v25, %v427_v29  ;;  %v938_v28 = vld [vmem:[%s1258_s8] ss:$0 sm:$0xff] }
  0x98   : > { %v784_v33 = vsel %vm414_vm3, 1.0, %v1031_v31  ;;  %v786_v38 = vsel %vm428_vm4, 1.0, %v1031_v31 }
  0x99   : > { %v417_v34 = vadd.f32 %v784_v33, %v783_v32 }
  0x9b   : > { %v424_v36 = vadd.f32 %v785_v35, %v417_v34 }
  0x9d   : > { %v431_v40 = vadd.f32 %v786_v38, %v424_v36 }
  0x9f   : > { %v438_v42 = vadd.f32 %v787_v41, %v431_v40  ;;  %v448_v43 = vpop.permute.xlu1 %447 }
  0xa0   : > { %vm449_vm8 = vcmp.eq.s32.totalorder %v403_v25, %v448_v43  ;;  %v937_v25 = vld [vmem:[%s1257_s7] ss:$0 sm:$0xff] }
  0xa1   : > { %v445_v45 = vadd.f32 %v788_v44, %v438_v42  ;;  %v789_v46 = vsel %vm449_vm8, 1.0, %v1031_v31 }
  0xa3   : > { %v452_v48 = vadd.f32 %v789_v46, %v445_v45 }
  0xa5   : > { %v459_v49 = vadd.f32 %v790_v47, %v452_v48 }
  0xa7   : > { %v460_v50 = vpack.c.bf16 %v459_v49, %v459_v49 }
  0xa9   : > { %811 = vmatmul.msk.bf16.vlgmr.msra.gmra.mxu0 %vm509_vm9, %v460_v50 }
 0x126   : > { %v526_v54 = vpop.f32.mrf.mxu0 }
 0x127   : > { %v527_v55 = vadd.f32 %v935_v53, %v526_v54 }
 0x129   : > { %v530_v56 = vmax.f32 %v527_v55, 0.0 }
 0x12b   : > { %v531_v57 = vpack.c.bf16 %v530_v56, %v530_v56 }
 0x12d   : > { %608 = vmatmul.bf16.vlgmr.msra.gmra.mxu1 %v531_v57 }
 0x12e   : > { %v528_v58 = vpop.f32.mrf.mxu0 }
 0x1aa   : > { %v609_v63 = vpop.f32.mrf.mxu1 }
 0x1ab   : > { %v610_v0 = vadd.f32 %v936_v61, %v609_v63 }
 0x1ad   : > { %v614_v1 = vadd.f32 %v613_v62, %v610_v0 }
 0x1af   : > { %v616_v2 = vsel %vm615_vm10, %v614_v1, 0.0 }
 0x1b0   : > { %617 = vadd.xlane.f32.xlu0 %v616_v2 }
 0x1b2   : > { %v611_v3 = vpop.f32.mrf.mxu1 }
 0x223   : > { %v618_v11 = vpop.xlane.xlu0 %617 }
 0x224   : > { %v626_v12 = vmul.f32 %v625_v10, %v618_v11 }
 0x226   : > { %v627_v13 = vsub.f32 %v614_v1, %v626_v12 }
 0x228   : > { %v628_v14 = vmul.f32 %v627_v13, %v627_v13 }
 0x22a   : > { %v629_v15 = vsel %vm615_vm10, %v628_v14, 0.0 }
 0x22b   : > { %630 = vadd.xlane.f32.xlu1 %v629_v15 }
 0x29e   : > { %v631_v16 = vpop.xlane.xlu1 %630 }
 0x29f   : > { %v632_v17 = vmul.f32 %v631_v16, %v625_v10 }
 0x2a1   : > { %v633_v18 = vadd.f32 1e-12, %v632_v17 }
 0x2a3   : > { %941 = vrsqrt.f32 %v633_v18  ;;  %vm640_vm13 = vweird.f32 %v633_v18 }
 0x2a9   : > { %v942_v19 = vpop.eup %941 }
 0x2aa   : > { %v635_v20 = vmul.f32 %v942_v19, %v633_v18  ;;  %vm641_vm12 = vweird.f32 %v942_v19 }
 0x2ab   : > { %vm642_vm14 = vmor %vm640_vm13, %vm641_vm12 }
 0x2ac   : > { %v636_v21 = vmul.f32 %v942_v19, %v635_v20 }
 0x2ae   : > { %v637_v22 = vmul.f32 0.5, %v636_v21 }
 0x2b0   : > { %v638_v23 = vsub.f32 1.5, %v637_v22 }
 0x2b2   : > { %v639_v24 = vmul.f32 %v942_v19, %v638_v23 }
 0x2b4   : > { %v643_v26 = vsel %vm642_vm14, %v942_v19, %v639_v24 }
 0x2b5   : > { %v644_v27 = vmul.f32 %v643_v26, %v627_v13 }
 0x2b7   : > { %v649_v29 = vmul.f32 %v937_v25, %v644_v27 }
 0x2b9   : > { %v654_v30 = vadd.f32 %v938_v28, %v649_v29 }
 0x2bb   : > { %655 = vst.msk [vmem:[%s379_s26] sm:$0xff] %vm615_vm10, %v654_v30 }
 0x2bc   : > { %970 = shalt.err (!%p967_p5)
}
 0x2bd   : > { %861 = dma.vmem_to_hbm [thread:$0]  (%p1123_p4), %s671_s12, 128, %s673_s0, %s657_s28  }
 0x2be PF: > { %p867_p6 = scmp.ge.s32.totalorder %s1021_s14, 2  ;;  %s684_s23 = sand.u32 1, %s1001_s30  }
 0x2bf   : > { %s685_s25 = scalar_lea.sflag [#allocation3], %s684_s23 }
 0x2c0   : > { %p864_p7 = pnand %p867_p6, %p1130_p8 }
 0x2c2   : > { %p865_p9 = pneg %p864_p7 }
 0x2c4   : > { %996 = dma.done.wait (%p865_p9), %s685_s25, 128  }
 0x2c5   : > { %998 = vsyncadd (%p865_p9), %s685_s25, 4294967168  ;;  %s22_s14 = sadd.s32 1, %s1021_s14   ;;  %s1266_s30 = smov %s1005_s10 }
 0x2c6   : > { %p19_p10 = scmp.ge.s32.totalorder %s22_s14, 4   ;;  %s1267_s10 = smov %s1009_s11 }
 0x2c7   : > { %s1268_s11 = smov %s1136_s22  ;;  %s1269_s12 = smov %s1017_s13 }
 0x2c8   : > { %s1270_s13 = smov %s1272_s17  ;;  %21 = sbr.rel (!%p19_p10) target bundleno = 6 (0x6), region = 97 }
 0x2cd   :  { %691 = vsyncpa [#allocation3], 1 }
 0x2ce   :  { %693 = vsyncpa [#allocation3 + $0x1], 1 }

</bundles_post_ra>
